<compile_context>
chip_gen: v7x
topology: tpu7x:2x2x1
jax: 0.10.0
libtpu: 0.0.40
codegen_flags: <defaults>
</compile_context>

<pallas_src>
import jax
import jax.numpy as jnp
from jax.experimental import pallas as pl
from jax.experimental.pallas import tpu as pltpu


def _round_up(x, m):
    return ((x + m - 1) // m) * m


def _pick_tile_m(M, max_tile=1024):
    """Largest 8-aligned M tile <= max_tile; prefer exact divisors of M."""
    if M <= max_tile:
        return M                       # one block == full dim (always legal)
    for t in range(max_tile, 7, -8):   # 8-aligned candidates, descending
        if M % t == 0:
            return t                   # divides M -> no wasted rows, grid >= 2
    return 512                         # ragged last block; Pallas masks OOB


def _patch_embed_kernel(x_ref, w_ref, b_ref, o_ref):
    # x_ref: (tile_m, K) bf16, w_ref: (K, E_pad) bf16, b_ref: (1, E_pad) f32.
    acc = jnp.dot(x_ref[...], w_ref[...], preferred_element_type=jnp.float32)
    o_ref[...] = (acc + b_ref[...]).astype(o_ref.dtype)


def patch_embed_matmul(patches, w_bf16, b_padded, out_dtype,
                       single_buffer_consts=True):
    """patches: (M, K) bf16; w_bf16: (K, E_pad) bf16; b_padded: (1, E_pad) f32.

    Returns (M, E_pad) in out_dtype.
    """
    M, K = patches.shape
    E_pad = w_bf16.shape[1]

    tile_m = _pick_tile_m(M)
    grid_m = pl.cdiv(M, tile_m)

    # Scheduler hint; bytes track the actual operand/output dtypes.
    cost = pl.CostEstimate(
        flops=2 * M * K * E_pad,
        transcendentals=0,
        bytes_accessed=(M * K * patches.dtype.itemsize
                        + K * E_pad * w_bf16.dtype.itemsize
                        + E_pad * b_padded.dtype.itemsize
                        + M * E_pad * jnp.dtype(out_dtype).itemsize),
    )

    # Weight / bias have constant index_maps: single-buffer them to free VMEM
    # (their second pipeline buffer is never used).  Falls back gracefully on
    # JAX versions without pipeline_mode / Buffered(1).
    const_kwargs = dict(pipeline_mode=pl.Buffered(1)) if single_buffer_consts else {}

    out = pl.pallas_call(
        _patch_embed_kernel,
        out_shape=jax.ShapeDtypeStruct((M, E_pad), out_dtype),
        grid_spec=pltpu.PrefetchScalarGridSpec(
            num_scalar_prefetch=0,
            grid=(grid_m,),
            in_specs=[
                pl.BlockSpec((tile_m, K), lambda i: (i, 0)),                  # LHS: M-tiled
                pl.BlockSpec((K, E_pad), lambda i: (0, 0), **const_kwargs),   # W: VMEM-resident
                pl.BlockSpec((1, E_pad), lambda i: (0, 0), **const_kwargs),   # bias
            ],
            out_specs=pl.BlockSpec((tile_m, E_pad), lambda i: (i, 0)),
        ),
        compiler_params=pltpu.CompilerParams(
            dimension_semantics=("parallel",),
            vmem_limit_bytes=32 * 1024 * 1024,
        ),
        cost_estimate=cost,
    )(patches, w_bf16, b_padded)
    return out


class PatchEmbed:
    """JAX/Pallas equivalent of the VideoMAEv2 PatchEmbed module."""

    def __init__(self, img_size=224, patch_size=16, in_chans=3, embed_dim=768,
                 num_frames=16, tubelet_size=2, out_dtype=None, key=None):
        img_size = (img_size, img_size) if isinstance(img_size, int) else tuple(img_size)
        patch_size = (patch_size, patch_size) if isinstance(patch_size, int) else tuple(patch_size)
        self.img_size = img_size
        self.patch_size = patch_size
        self.tubelet_size = tubelet_size
        self.in_chans = in_chans
        self.embed_dim = embed_dim
        # None -> x.dtype if floating else bf16; pass jnp.bfloat16 explicitly to
        # halve output HBM writes when the downstream consumer accepts bf16.
        self.out_dtype = out_dtype
        num_spatial = (img_size[0] // patch_size[0]) * (img_size[1] // patch_size[1])
        self.num_patches = num_spatial * (num_frames // tubelet_size)

        if key is None:
            key = jax.random.PRNGKey(42)
        kw, kb = jax.random.split(key)
        # Conv3d weight layout: (E, C, tubelet, pH, pW); deterministic init.
        fan_in = in_chans * tubelet_size * patch_size[0] * patch_size[1]
        bound = 1.0 / (fan_in ** 0.5)
        self.weight = jax.random.uniform(
            kw, (embed_dim, in_chans, tubelet_size, patch_size[0], patch_size[1]),
            dtype=jnp.float32, minval=-bound, maxval=bound)
        self.bias = jax.random.uniform(
            kb, (embed_dim,), dtype=jnp.float32, minval=-bound, maxval=bound)

        # Precompute GEMM-layout parameters once (not per forward call):
        # (E, C, tub, pH, pW) -> (K, E), pad E to a lane-dense multiple of 128,
        # cast the weight to bf16 (accumulation stays f32 in the kernel).
        K = fan_in
        E_pad = _round_up(embed_dim, 128)
        self.embed_dim_pad = E_pad
        w2d = self.weight.reshape(embed_dim, K).T                        # (K, E)
        self.w_gemm = jnp.pad(
            w2d, ((0, 0), (0, E_pad - embed_dim))).astype(jnp.bfloat16)  # (K, E_pad)
        self.b_gemm = jnp.pad(
            self.bias, (0, E_pad - embed_dim)).reshape(1, E_pad).astype(jnp.float32)

        # Jit the whole forward so the bf16 cast fuses into the patch transpose.
        self._fwd = jax.jit(self._forward, static_argnums=(1,))

    def _forward(self, x, single_buffer_consts):
        # x: (B, C, T, H, W)  -- PyTorch NCTHW layout.
        B, C, T, H, W = x.shape
        tub = self.tubelet_size
        pH, pW = self.patch_size
        Tp, Hp, Wp = T // tub, H // pH, W // pW
        M = B * Tp * Hp * Wp
        K = C * tub * pH * pW

        out_dtype = self.out_dtype
        if out_dtype is None:
            out_dtype = x.dtype if jnp.issubdtype(x.dtype, jnp.floating) else jnp.bfloat16

        # Cast to the MXU input dtype *before* the patch gather so the convert
        # fuses into the transpose (one bf16 HBM pass instead of f32 + cast).
        xb = x.astype(jnp.bfloat16)
        # Non-overlapping tubelet patches: free reshape + one fused transpose.
        # Patch index order (Tp, Hp, Wp) and patch-content order (C, tub, pH, pW)
        # match the Conv3d output flatten order and the weight layout.
        xp = xb.reshape(B, C, Tp, tub, Hp, pH, Wp, pW)
        xp = jnp.transpose(xp, (0, 2, 4, 6, 1, 3, 5, 7))
        patches = xp.reshape(M, K)

        out = patch_embed_matmul(patches, self.w_gemm, self.b_gemm, out_dtype,
                                 single_buffer_consts=single_buffer_consts)
        if self.embed_dim_pad != self.embed_dim:
            out = out[:, :self.embed_dim]          # lane-padding slice-back
        return out.reshape(B, Tp * Hp * Wp, self.embed_dim)

    def __call__(self, x):
        try:
            return self._fwd(x, True)
        except Exception:
            # Fallback: this JAX build rejects pl.Buffered(1) single-buffering
            # of the constant-index weight/bias; retry with default buffering.
            return self._fwd(x, False)


if __name__ == "__main__":
    key = jax.random.PRNGKey(0)
    k_x, k_param = jax.random.split(key)

    B, C, T, H, W = 2, 3, 4, 16, 16
    x = jax.random.normal(k_x, (B, C, T, H, W), dtype=jnp.float32)

    mod = PatchEmbed(img_size=16, patch_size=8, in_chans=C, embed_dim=32,
                     num_frames=T, tubelet_size=2, key=k_param)
    out = jax.block_until_ready(mod(x))

    # Reference check against lax conv (same semantics as nn.Conv3d).
    ref = jax.lax.conv_general_dilated(
        x, mod.weight,
        window_strides=(2, 8, 8), padding="VALID",
        dimension_numbers=("NCDHW", "OIDHW", "NCDHW"),
    ) + mod.bias.reshape(1, -1, 1, 1, 1)
    ref = ref.reshape(B, 32, -1).transpose(0, 2, 1)

    assert out.shape == (B, mod.num_patches, 32), out.shape
    # Tolerance loosened for bf16 matmul inputs (accumulation is still f32).
    assert jnp.allclose(out, ref, atol=3e-2, rtol=3e-2), (
        float(jnp.max(jnp.abs(out - ref))))

    print("KERNEL_OK")
</pallas_src>

<mosaic_0001>
module attributes {stable_mosaic.version = 11 : i64} {
  func.func @_patch_embed_kernel(%arg0: i32, %arg1: memref<16x384xbf16, #tpu.memory_space<vmem>>, %arg2: memref<384x128xbf16, #tpu.memory_space<vmem>>, %arg3: memref<1x128xf32, #tpu.memory_space<vmem>>, %arg4: memref<16x128xf32, #tpu.memory_space<vmem>>) attributes {dimension_semantics = [#tpu.dimension_semantics<parallel>], iteration_bounds = array<i64: 1>, scalar_prefetch = 0 : i64, scratch_operands = 0 : i64, tpu.core_type = #tpu.core_type<tc>, window_params = [{transform_indices = @transform_0, window_bounds = array<i64: 16, 384>}, {pipeline_mode = #tpu.pipeline_mode<synchronous>, transform_indices = @transform_1, window_bounds = array<i64: 384, 128>}, {pipeline_mode = #tpu.pipeline_mode<synchronous>, transform_indices = @transform_2, window_bounds = array<i64: 1, 128>}, {transform_indices = @transform_3, window_bounds = array<i64: 16, 128>}]} {
    %c0 = arith.constant 0 : index
    %c0_0 = arith.constant 0 : index
    %0 = vector.load %arg1[%c0, %c0_0] : memref<16x384xbf16, #tpu.memory_space<vmem>>, vector<16x384xbf16>
    %c0_1 = arith.constant 0 : index
    %c0_2 = arith.constant 0 : index
    %1 = vector.load %arg2[%c0_1, %c0_2] : memref<384x128xbf16, #tpu.memory_space<vmem>>, vector<384x128xbf16>
    %cst = arith.constant dense<0.000000e+00> : vector<16x128xf32>
    %2 = tpu.matmul %0, %1, %cst {dimension_numbers = #tpu.dot_dimension_numbers<[1], [0], [0], [1], [0, 0, 1, 1], [], []>} : vector<16x384xbf16>, vector<384x128xbf16>, vector<16x128xf32> -> vector<16x128xf32>
    %c0_3 = arith.constant 0 : index
    %c0_4 = arith.constant 0 : index
    %3 = vector.load %arg3[%c0_3, %c0_4] : memref<1x128xf32, #tpu.memory_space<vmem>>, vector<1x128xf32>
    %4 = vector.broadcast %3 : vector<1x128xf32> to vector<16x128xf32>
    %5 = arith.addf %2, %4 : vector<16x128xf32>
    %c0_5 = arith.constant 0 : index
    %c0_6 = arith.constant 0 : index
    %6 = vector.load %arg4[%c0_5, %c0_6] : memref<16x128xf32, #tpu.memory_space<vmem>>, vector<16x128xf32>
    tpu.vector_store %arg4[%c0_5, %c0_6], %5 {strides = array<i32>} : memref<16x128xf32, #tpu.memory_space<vmem>>, vector<16x128xf32>,
    return
  }
  func.func @transform_0(%arg0: i32) -> (i32, i32) {
    %c0_i32 = arith.constant 0 : i32
    %c0_i32_0 = arith.constant 0 : i32
    return %arg0, %c0_i32 : i32, i32
  }
  func.func @transform_1(%arg0: i32) -> (i32, i32) {
    %c0_i32 = arith.constant 0 : i32
    %c0_i32_0 = arith.constant 0 : i32
    %c0_i32_1 = arith.constant 0 : i32
    return %c0_i32, %c0_i32_0 : i32, i32
  }
  func.func @transform_2(%arg0: i32) -> (i32, i32) {
    %c0_i32 = arith.constant 0 : i32
    %c0_i32_0 = arith.constant 0 : i32
    %c0_i32_1 = arith.constant 0 : i32
    return %c0_i32, %c0_i32_0 : i32, i32
  }
  func.func @transform_3(%arg0: i32) -> (i32, i32) {
    %c0_i32 = arith.constant 0 : i32
    %c0_i32_0 = arith.constant 0 : i32
    return %arg0, %c0_i32 : i32, i32
  }
}

module attributes {stable_mosaic.version = 11 : i64} {
  func.func @_patch_embed_kernel(%arg0: i32, %arg1: memref<16x384xbf16, #tpu.memory_space<vmem>>, %arg2: memref<384x128xbf16, #tpu.memory_space<vmem>>, %arg3: memref<1x128xf32, #tpu.memory_space<vmem>>, %arg4: memref<16x128xf32, #tpu.memory_space<vmem>>) attributes {dimension_semantics = [#tpu.dimension_semantics<parallel>], iteration_bounds = array<i64: 1>, scalar_prefetch = 0 : i64, scratch_operands = 0 : i64, tpu.core_type = #tpu.core_type<tc>, window_params = [{transform_indices = @transform_0, window_bounds = array<i64: 16, 384>}, {pipeline_mode = #tpu.pipeline_mode<synchronous>, transform_indices = @transform_1, window_bounds = array<i64: 384, 128>}, {pipeline_mode = #tpu.pipeline_mode<synchronous>, transform_indices = @transform_2, window_bounds = array<i64: 1, 128>}, {transform_indices = @transform_3, window_bounds = array<i64: 16, 128>}]} {
    %c0 = arith.constant 0 : index
    %c0_0 = arith.constant 0 : index
    %0 = vector.load %arg1[%c0, %c0_0] : memref<16x384xbf16, #tpu.memory_space<vmem>>, vector<16x384xbf16>
    %c0_1 = arith.constant 0 : index
    %c0_2 = arith.constant 0 : index
    %1 = vector.load %arg2[%c0_1, %c0_2] : memref<384x128xbf16, #tpu.memory_space<vmem>>, vector<384x128xbf16>
    %cst = arith.constant dense<0.000000e+00> : vector<16x128xf32>
    %2 = tpu.matmul %0, %1, %cst {dimension_numbers = #tpu.dot_dimension_numbers<[1], [0], [0], [1], [0, 0, 1, 1], [], []>} : vector<16x384xbf16>, vector<384x128xbf16>, vector<16x128xf32> -> vector<16x128xf32>
    %c0_3 = arith.constant 0 : index
    %c0_4 = arith.constant 0 : index
    %3 = vector.load %arg3[%c0_3, %c0_4] : memref<1x128xf32, #tpu.memory_space<vmem>>, vector<1x128xf32>
    %4 = vector.broadcast %3 : vector<1x128xf32> to vector<16x128xf32>
    %5 = arith.addf %2, %4 : vector<16x128xf32>
    %c0_5 = arith.constant 0 : index
    %c0_6 = arith.constant 0 : index
    %6 = vector.load %arg4[%c0_5, %c0_6] : memref<16x128xf32, #tpu.memory_space<vmem>>, vector<16x128xf32>
    tpu.vector_store %arg4[%c0_5, %c0_6], %5 {strides = array<i32>} : memref<16x128xf32, #tpu.memory_space<vmem>>, vector<16x128xf32>,
    return
  }
  func.func @transform_0(%arg0: i32) -> (i32, i32) {
    %c0_i32 = arith.constant 0 : i32
    %c0_i32_0 = arith.constant 0 : i32
    return %arg0, %c0_i32 : i32, i32
  }
  func.func @transform_1(%arg0: i32) -> (i32, i32) {
    %c0_i32 = arith.constant 0 : i32
    %c0_i32_0 = arith.constant 0 : i32
    %c0_i32_1 = arith.constant 0 : i32
    return %c0_i32, %c0_i32_0 : i32, i32
  }
  func.func @transform_2(%arg0: i32) -> (i32, i32) {
    %c0_i32 = arith.constant 0 : i32
    %c0_i32_0 = arith.constant 0 : i32
    %c0_i32_1 = arith.constant 0 : i32
    return %c0_i32, %c0_i32_0 : i32, i32
  }
  func.func @transform_3(%arg0: i32) -> (i32, i32) {
    %c0_i32 = arith.constant 0 : i32
    %c0_i32_0 = arith.constant 0 : i32
    return %arg0, %c0_i32 : i32, i32
  }
}

</mosaic_0001>

<bundles_post_ra>
// kernel: _forward.1
= control target key start
LH: loop header
LB: loop body
LE: loop exit
PB: predicated region body
PF: predicated region fallthrough
CT: control target
= control target key end

     0   :  { %v431_v1 = vmov 0.0   ;;  %vm432_vm0 = vmmov 0   ;;  %s543_s1 = inlined_call_operand.vmem [shape: bf16[384,128], index: 1, kind: input, shape index: {}]   ;;  %s544_s0 = inlined_call_operand.vmem [shape: bf16[16,384], index: 0, kind: input, shape index: {}]   ;;  %s545_s2 = inlined_call_operand.vmem [shape: f32[1,128], index: 2, kind: input, shape index: {}]   ;;  %s546_s3 = inlined_call_operand.vmem [shape: f32[16,128], index: 3, kind: output, shape index: {}]  }
   0x1   :  { %v403_v0 = vld [vmem:[%s543_s1 + $0x40] sm:$0xff]   ;;  %381 = vmatprep.subr.bf16.mxu1 %v431_v1  ;;  %397 = vmatprep.mubr.msk.bf16.mxu1 %vm432_vm0, %v431_v1  ;;  %v406_v4 = vld [vmem:[%s543_s1 + $0x48] sm:$0xff]   ;;  %v409_v7 = vld [vmem:[%s543_s1 + $0x50] sm:$0xff]  }
   0x2   :  { %v404_v2 = vld [vmem:[%s543_s1] sm:$0xff]   ;;  %350 = vmatprep.subr.bf16.mxu0 %v403_v0  ;;  %v407_v5 = vld [vmem:[%s543_s1 + $0x8] sm:$0xff]   ;;  %v410_v8 = vld [vmem:[%s543_s1 + $0x10] sm:$0xff]  }
   0x3   :  { %v405_v3 = vld [vmem:[%s543_s1 + $0x80] sm:$0xff]   ;;  %351 = vmatpush3.bf16.msra.mxu0 %v404_v2  ;;  %v408_v6 = vld [vmem:[%s543_s1 + $0x88] sm:$0xff]   ;;  %v411_v9 = vld [vmem:[%s543_s1 + $0x90] sm:$0xff]  }
   0x4   :  { %382 = vmatpush3.bf16.msra.mxu1 %v405_v3  ;;  %352 = vmatprep.subr.bf16.mxu0 %v406_v4  ;;  %v412_v10 = vld [vmem:[%s543_s1 + $0x58] sm:$0xff]   ;;  %v415_v13 = vld [vmem:[%s543_s1 + $0x60] sm:$0xff]   ;;  %v418_v16 = vld [vmem:[%s543_s1 + $0x68] sm:$0xff]  }
   0x5   :  { %383 = vmatprep.subr.bf16.mxu1 %v431_v1  ;;  %v413_v11 = vld [vmem:[%s543_s1 + $0x18] sm:$0xff]   ;;  %v416_v14 = vld [vmem:[%s543_s1 + $0x20] sm:$0xff]   ;;  %v419_v17 = vld [vmem:[%s543_s1 + $0x28] sm:$0xff]  }
   0x6   :  { %v414_v12 = vld [vmem:[%s543_s1 + $0x98] sm:$0xff]   ;;  %v417_v15 = vld [vmem:[%s543_s1 + $0xa0] sm:$0xff]   ;;  %v420_v18 = vld [vmem:[%s543_s1 + $0xa8] sm:$0xff]  }
   0x7   :  { %353 = vmatpush3.bf16.msra.mxu0 %v407_v5  ;;  %v421_v19 = vld [vmem:[%s543_s1 + $0x70] sm:$0xff]   ;;  %v424_v22 = vld [vmem:[%s543_s1 + $0x78] sm:$0xff]   ;;  %v426_v26 = vld [vmem:[%s544_s0] ss:$12 sps:$4 sm:$0xff]  }
   0x8   :  { %384 = vmatpush3.bf16.msra.mxu1 %v408_v6  ;;  %354 = vmatprep.subr.bf16.mxu0 %v409_v7  ;;  %v422_v20 = vld [vmem:[%s543_s1 + $0x30] sm:$0xff]   ;;  %v425_v24 = vld [vmem:[%s543_s1 + $0x38] sm:$0xff]   ;;  %v322_v30 = vld [vmem:[%s545_s2] ss:$0 sm:$0xff] }
   0x9   :  { %385 = vmatprep.subr.bf16.mxu1 %v431_v1  ;;  %v423_v21 = vld [vmem:[%s543_s1 + $0xb0] sm:$0xff]   ;;  %v429_v25 = vld [vmem:[%s543_s1 + $0xb8] sm:$0xff]  }
   0xa   :  { %v428_v23 = vld [vmem:[%s544_s0 + $0x4] ss:$12 sps:$4 sm:$0xff]   ;;  %v430_v27 = vld [vmem:[%s544_s0 + $0x8] ss:$12 sps:$4 sm:$0xff]  }
   0xb   :  { %355 = vmatpush3.bf16.msra.mxu0 %v410_v8  ;;  %266 = vmatprep.mubr.bf16.mxu0 %v428_v23 }
   0xc   :  { %386 = vmatpush3.bf16.msra.mxu1 %v411_v9  ;;  %356 = vmatprep.subr.bf16.mxu0 %v412_v10 }
   0xd   :  { %387 = vmatprep.subr.bf16.mxu1 %v431_v1 }
   0xf   :  { %357 = vmatpush3.bf16.msra.mxu0 %v413_v11 }
  0x10   :  { %388 = vmatpush3.bf16.msra.mxu1 %v414_v12  ;;  %358 = vmatprep.subr.bf16.mxu0 %v415_v13 }
  0x11   :  { %389 = vmatprep.subr.bf16.mxu1 %v431_v1 }
  0x13   :  { %359 = vmatpush3.bf16.msra.mxu0 %v416_v14 }
  0x14   :  { %390 = vmatpush3.bf16.msra.mxu1 %v417_v15  ;;  %360 = vmatprep.subr.bf16.mxu0 %v418_v16 }
  0x15   :  { %391 = vmatprep.subr.bf16.mxu1 %v431_v1 }
  0x17   :  { %361 = vmatpush3.bf16.msra.mxu0 %v419_v17 }
  0x18   :  { %392 = vmatpush3.bf16.msra.mxu1 %v420_v18  ;;  %362 = vmatprep.subr.bf16.mxu0 %v421_v19 }
  0x19   :  { %393 = vmatprep.subr.bf16.mxu1 %v431_v1 }
  0x1b   :  { %363 = vmatpush3.bf16.msra.mxu0 %v422_v20 }
  0x1c   :  { %394 = vmatpush3.bf16.msra.mxu1 %v423_v21  ;;  %364 = vmatprep.subr.bf16.mxu0 %v424_v22 }
  0x1d   :  { %395 = vmatprep.subr.bf16.mxu1 %v431_v1 }
  0x1f   :  { %365 = vmatpush3.bf16.msra.mxu0 %v425_v24 }
  0x20   :  { %396 = vmatpush3.bf16.msra.mxu1 %v429_v25 }
  0x22   :  { %267 = vmatmul.mubr.bf16.vlgmr.msra.gmra.mrb[0].mxu0 %v426_v26 }
  0x23   :  { %398 = vmatmul.mubr.bf16.vlgmr.msra.gmra.mrb[0].mxu1 %v430_v27 }
  0xf5   :  { %v366_v28 = vpop.f32.mrb[0].mxu0 }
  0xf6   :  { %v367_v29 = vpop.f32.mrb[1].mxu0  ;;  %v309_v31 = vpop.f32.mrb[0].mxu1 }
  0xf7   :  { %v368_v32 = vadd.f32 %v367_v29, %v366_v28  ;;  %v369_v33 = vpop.f32.mrb[2].mxu0  ;;  %v399_v34 = vpop.f32.mrb[1].mxu1 }
  0xf8   :  { %v370_v35 = vpop.f32.mrb[3].mxu0  ;;  %v312_v36 = vpop.f32.mrb[2].mxu1 }
  0xf9   :  { %v269_v37 = vadd.f32 %v368_v32, %v322_v30  ;;  %v371_v38 = vadd.f32 %v370_v35, %v369_v33  ;;  %v400_v39 = vpop.f32.mrb[3].mxu1 }
  0xfb   :  { %v310_v40 = vadd.f32 %v309_v31, %v269_v37  ;;  %v272_v41 = vadd.f32 %v371_v38, %v322_v30 }
  0xfd   :  { %316 = vst [vmem:[%s546_s3] sm:$0xff] %v310_v40  ;;  %v313_v42 = vadd.f32 %v312_v36, %v272_v41 }
  0xff   :  { %317 = vst [vmem:[%s546_s3 + $0x8] sm:$0xff] %v313_v42 }

// kernel: _forward.1
= control target key start
LH: loop header
LB: loop body
LE: loop exit
PB: predicated region body
PF: predicated region fallthrough
CT: control target
= control target key end

     0   :  { %v431_v1 = vmov 0.0   ;;  %vm432_vm0 = vmmov 0   ;;  %s543_s1 = inlined_call_operand.vmem [shape: bf16[384,128], index: 1, kind: input, shape index: {}]   ;;  %s544_s0 = inlined_call_operand.vmem [shape: bf16[16,384], index: 0, kind: input, shape index: {}]   ;;  %s545_s2 = inlined_call_operand.vmem [shape: f32[1,128], index: 2, kind: input, shape index: {}]   ;;  %s546_s3 = inlined_call_operand.vmem [shape: f32[16,128], index: 3, kind: output, shape index: {}]  }
   0x1   :  { %v403_v0 = vld [vmem:[%s543_s1 + $0x40] sm:$0xff]   ;;  %381 = vmatprep.subr.bf16.mxu1 %v431_v1  ;;  %397 = vmatprep.mubr.msk.bf16.mxu1 %vm432_vm0, %v431_v1  ;;  %v406_v4 = vld [vmem:[%s543_s1 + $0x48] sm:$0xff]   ;;  %v409_v7 = vld [vmem:[%s543_s1 + $0x50] sm:$0xff]  }
   0x2   :  { %v404_v2 = vld [vmem:[%s543_s1] sm:$0xff]   ;;  %350 = vmatprep.subr.bf16.mxu0 %v403_v0  ;;  %v407_v5 = vld [vmem:[%s543_s1 + $0x8] sm:$0xff]   ;;  %v410_v8 = vld [vmem:[%s543_s1 + $0x10] sm:$0xff]  }
   0x3   :  { %v405_v3 = vld [vmem:[%s543_s1 + $0x80] sm:$0xff]   ;;  %351 = vmatpush3.bf16.msra.mxu0 %v404_v2  ;;  %v408_v6 = vld [vmem:[%s543_s1 + $0x88] sm:$0xff]   ;;  %v411_v9 = vld [vmem:[%s543_s1 + $0x90] sm:$0xff]  }
   0x4   :  { %382 = vmatpush3.bf16.msra.mxu1 %v405_v3  ;;  %352 = vmatprep.subr.bf16.mxu0 %v406_v4  ;;  %v412_v10 = vld [vmem:[%s543_s1 + $0x58] sm:$0xff]   ;;  %v415_v13 = vld [vmem:[%s543_s1 + $0x60] sm:$0xff]   ;;  %v418_v16 = vld [vmem:[%s543_s1 + $0x68] sm:$0xff]  }
   0x5   :  { %383 = vmatprep.subr.bf16.mxu1 %v431_v1  ;;  %v413_v11 = vld [vmem:[%s543_s1 + $0x18] sm:$0xff]   ;;  %v416_v14 = vld [vmem:[%s543_s1 + $0x20] sm:$0xff]   ;;  %v419_v17 = vld [vmem:[%s543_s1 + $0x28] sm:$0xff]  }
   0x6   :  { %v414_v12 = vld [vmem:[%s543_s1 + $0x98] sm:$0xff]   ;;  %v417_v15 = vld [vmem:[%s543_s1 + $0xa0] sm:$0xff]   ;;  %v420_v18 = vld [vmem:[%s543_s1 + $0xa8] sm:$0xff]  }
   0x7   :  { %353 = vmatpush3.bf16.msra.mxu0 %v407_v5  ;;  %v421_v19 = vld [vmem:[%s543_s1 + $0x70] sm:$0xff]   ;;  %v424_v22 = vld [vmem:[%s543_s1 + $0x78] sm:$0xff]   ;;  %v426_v26 = vld [vmem:[%s544_s0] ss:$12 sps:$4 sm:$0xff]  }
   0x8   :  { %384 = vmatpush3.bf16.msra.mxu1 %v408_v6  ;;  %354 = vmatprep.subr.bf16.mxu0 %v409_v7  ;;  %v422_v20 = vld [vmem:[%s543_s1 + $0x30] sm:$0xff]   ;;  %v425_v24 = vld [vmem:[%s543_s1 + $0x38] sm:$0xff]   ;;  %v322_v30 = vld [vmem:[%s545_s2] ss:$0 sm:$0xff] }
   0x9   :  { %385 = vmatprep.subr.bf16.mxu1 %v431_v1  ;;  %v423_v21 = vld [vmem:[%s543_s1 + $0xb0] sm:$0xff]   ;;  %v429_v25 = vld [vmem:[%s543_s1 + $0xb8] sm:$0xff]  }
   0xa   :  { %v428_v23 = vld [vmem:[%s544_s0 + $0x4] ss:$12 sps:$4 sm:$0xff]   ;;  %v430_v27 = vld [vmem:[%s544_s0 + $0x8] ss:$12 sps:$4 sm:$0xff]  }
   0xb   :  { %355 = vmatpush3.bf16.msra.mxu0 %v410_v8  ;;  %266 = vmatprep.mubr.bf16.mxu0 %v428_v23 }
   0xc   :  { %386 = vmatpush3.bf16.msra.mxu1 %v411_v9  ;;  %356 = vmatprep.subr.bf16.mxu0 %v412_v10 }
   0xd   :  { %387 = vmatprep.subr.bf16.mxu1 %v431_v1 }
   0xf   :  { %357 = vmatpush3.bf16.msra.mxu0 %v413_v11 }
  0x10   :  { %388 = vmatpush3.bf16.msra.mxu1 %v414_v12  ;;  %358 = vmatprep.subr.bf16.mxu0 %v415_v13 }
  0x11   :  { %389 = vmatprep.subr.bf16.mxu1 %v431_v1 }
  0x13   :  { %359 = vmatpush3.bf16.msra.mxu0 %v416_v14 }
  0x14   :  { %390 = vmatpush3.bf16.msra.mxu1 %v417_v15  ;;  %360 = vmatprep.subr.bf16.mxu0 %v418_v16 }
  0x15   :  { %391 = vmatprep.subr.bf16.mxu1 %v431_v1 }
  0x17   :  { %361 = vmatpush3.bf16.msra.mxu0 %v419_v17 }
  0x18   :  { %392 = vmatpush3.bf16.msra.mxu1 %v420_v18  ;;  %362 = vmatprep.subr.bf16.mxu0 %v421_v19 }
  0x19   :  { %393 = vmatprep.subr.bf16.mxu1 %v431_v1 }
  0x1b   :  { %363 = vmatpush3.bf16.msra.mxu0 %v422_v20 }
  0x1c   :  { %394 = vmatpush3.bf16.msra.mxu1 %v423_v21  ;;  %364 = vmatprep.subr.bf16.mxu0 %v424_v22 }
  0x1d   :  { %395 = vmatprep.subr.bf16.mxu1 %v431_v1 }
  0x1f   :  { %365 = vmatpush3.bf16.msra.mxu0 %v425_v24 }
  0x20   :  { %396 = vmatpush3.bf16.msra.mxu1 %v429_v25 }
  0x22   :  { %267 = vmatmul.mubr.bf16.vlgmr.msra.gmra.mrb[0].mxu0 %v426_v26 }
  0x23   :  { %398 = vmatmul.mubr.bf16.vlgmr.msra.gmra.mrb[0].mxu1 %v430_v27 }
  0xf5   :  { %v366_v28 = vpop.f32.mrb[0].mxu0 }
  0xf6   :  { %v367_v29 = vpop.f32.mrb[1].mxu0  ;;  %v309_v31 = vpop.f32.mrb[0].mxu1 }
  0xf7   :  { %v368_v32 = vadd.f32 %v367_v29, %v366_v28  ;;  %v369_v33 = vpop.f32.mrb[2].mxu0  ;;  %v399_v34 = vpop.f32.mrb[1].mxu1 }
  0xf8   :  { %v370_v35 = vpop.f32.mrb[3].mxu0  ;;  %v312_v36 = vpop.f32.mrb[2].mxu1 }
  0xf9   :  { %v269_v37 = vadd.f32 %v368_v32, %v322_v30  ;;  %v371_v38 = vadd.f32 %v370_v35, %v369_v33  ;;  %v400_v39 = vpop.f32.mrb[3].mxu1 }
  0xfb   :  { %v310_v40 = vadd.f32 %v309_v31, %v269_v37  ;;  %v272_v41 = vadd.f32 %v371_v38, %v322_v30 }
  0xfd   :  { %316 = vst [vmem:[%s546_s3] sm:$0xff] %v310_v40  ;;  %v313_v42 = vadd.f32 %v312_v36, %v272_v41 }
  0xff   :  { %317 = vst [vmem:[%s546_s3 + $0x8] sm:$0xff] %v313_v42 }

</bundles_post_ra>
